<compile_context>
chip_gen: v5e
topology: v5e:2x2
jax: 0.10.0
libtpu: 0.0.40
codegen_flags: <defaults>
</compile_context>

<pallas_src>
import math

import jax
import jax.numpy as jnp
from jax.experimental import pallas as pl
from jax.experimental.pallas import tpu as pltpu


def _round_up(x, m):
    return ((x + m - 1) // m) * m


def _design_wrapper_kernel(x_ref, w_ref, b_ref, o_ref):
    # x_ref: (TM, D) compute dtype   w_ref: (D, Mpad) compute dtype
    # b_ref: (1, Mpad) f32           o_ref: (TM, Mpad) f32
    acc = jnp.dot(x_ref[...], w_ref[...],
                  preferred_element_type=jnp.float32)        # MXU, f32 accumulate
    o_ref[...] = (acc + b_ref[...]).astype(o_ref.dtype)       # VPU epilogue in f32


def make_design_wrapper(head_weights, head_biases, *,
                        compute_dtype=jnp.bfloat16, max_batch_tile=256):
    """Precompute the stacked weight slab / bias row once; return a jitted
    forward(x_nchw) -> (B, M) equivalent to torch.cat([m(X) for m in models], -1)."""
    D = int(head_weights[0].shape[0])
    M = len(head_weights)
    M_pad = max(128, _round_up(M, 128))          # lane-dense output / full MXU columns

    # Hoisted off the hot path: done exactly once at wrapper-construction time.
    W = jnp.stack([w.astype(jnp.float32) for w in head_weights], axis=-1)   # (D, M)
    W = jnp.pad(W, ((0, 0), (0, M_pad - M))).astype(compute_dtype)          # (D, Mpad)
    b = jnp.stack([jnp.asarray(v, jnp.float32) for v in head_biases])       # (M,)
    b = jnp.pad(b, (0, M_pad - M)).reshape(1, M_pad)                        # (1, Mpad) f32

    # Native sublane packing: 8 rows for f32, 16 for bf16, 32 for int8.
    sublane = 8 * (4 // jnp.dtype(compute_dtype).itemsize)

    @jax.jit
    def forward(x_nchw):
        B = x_nchw.shape[0]
        assert math.prod(x_nchw.shape[1:]) == D
        x_flat = x_nchw.reshape(B, D).astype(compute_dtype)

        # Batch tile: sublane-aligned, capped (MXU-height friendly on all gens).
        tm = min(max_batch_tile, _round_up(B, sublane))
        B_pad = _round_up(B, tm)
        if B_pad != B:
            x_flat = jnp.pad(x_flat, ((0, B_pad - B), (0, 0)))

        out = pl.pallas_call(
            _design_wrapper_kernel,
            out_shape=jax.ShapeDtypeStruct((B_pad, M_pad), jnp.float32),
            grid=(B_pad // tm,),
            in_specs=[
                pl.BlockSpec((tm, D), lambda i: (i, 0)),      # activation stream (pipelined)
                pl.BlockSpec((D, M_pad), lambda i: (0, 0)),   # weight slab, resident across grid
                pl.BlockSpec((1, M_pad), lambda i: (0, 0)),   # tiny f32 bias row
            ],
            out_specs=pl.BlockSpec((tm, M_pad), lambda i: (i, 0)),
            compiler_params=pltpu.CompilerParams(
                # independent row tiles -> megacore sharding on v7x, pipelined everywhere
                dimension_semantics=("parallel",),
            ),
        )(x_flat, W, b)

        return out[:B, :M]   # drop lane / sublane padding -> (B, M)

    return forward


if __name__ == "__main__":
    # Small shapes consistent with an NCHW conv-style input.
    B, C, H, Wd = 2, 4, 16, 16
    D = C * H * Wd
    NUM_MODELS = 3

    key = jax.random.PRNGKey(0)
    kx, kw, kb = jax.random.split(key, 3)

    X = jax.random.normal(kx, (B, C, H, Wd), dtype=jnp.float32)

    # Deterministic per-model Linear(D -> 1) parameters.
    wkeys = jax.random.split(kw, NUM_MODELS)
    bkeys = jax.random.split(kb, NUM_MODELS)
    head_weights = [
        jax.random.normal(wkeys[m], (D,), dtype=jnp.float32) * (1.0 / math.sqrt(D))
        for m in range(NUM_MODELS)
    ]
    head_biases = [
        jax.random.normal(bkeys[m], (), dtype=jnp.float32) for m in range(NUM_MODELS)
    ]

    # Factory precomputes the (D, Mpad) / (1, Mpad) slabs once (off the hot path).
    design_forward = make_design_wrapper(head_weights, head_biases)

    out = jax.block_until_ready(design_forward(X))
    assert out.shape == (B, NUM_MODELS)

    # Reference == torch.cat([model(X) for model in models], dim=-1), applying the
    # same bf16 input/weight quantization as the kernel (f32 accumulation).
    x_flat = X.reshape(B, D)
    xq = x_flat.astype(jnp.bfloat16).astype(jnp.float32)
    ref_cols = []
    for m in range(NUM_MODELS):
        wq = head_weights[m].astype(jnp.bfloat16).astype(jnp.float32).reshape(D, 1)
        ref_cols.append(xq @ wq + head_biases[m])
    ref = jnp.concatenate(ref_cols, axis=-1)
    assert jnp.allclose(out, ref, atol=1e-3, rtol=1e-3)

    # Loose sanity check against the full-f32 reference (bounds bf16 rounding error).
    ref_f32 = jnp.concatenate(
        [x_flat @ head_weights[m].reshape(D, 1) + head_biases[m]
         for m in range(NUM_MODELS)],
        axis=-1,
    )
    assert jnp.allclose(out, ref_f32, atol=5e-2, rtol=5e-2)

    print("KERNEL_OK")
</pallas_src>

<mosaic_0001>
module attributes {stable_mosaic.version = 11 : i64} {
  func.func @_design_wrapper_kernel(%arg0: i32, %arg1: memref<16x1024xbf16, #tpu.memory_space<vmem>>, %arg2: memref<1024x128xbf16, #tpu.memory_space<vmem>>, %arg3: memref<1x128xf32, #tpu.memory_space<vmem>>, %arg4: memref<16x128xf32, #tpu.memory_space<vmem>>) attributes {dimension_semantics = [#tpu.dimension_semantics<parallel>], iteration_bounds = array<i64: 1>, scalar_prefetch = 0 : i64, scratch_operands = 0 : i64, tpu.core_type = #tpu.core_type<tc>, window_params = [{transform_indices = @transform_0, window_bounds = array<i64: 16, 1024>}, {pipeline_mode = #tpu.pipeline_mode<synchronous>, transform_indices = @transform_1, window_bounds = array<i64: 1024, 128>}, {pipeline_mode = #tpu.pipeline_mode<synchronous>, transform_indices = @transform_2, window_bounds = array<i64: 1, 128>}, {transform_indices = @transform_3, window_bounds = array<i64: 16, 128>}]} {
    %c0 = arith.constant 0 : index
    %c0_0 = arith.constant 0 : index
    %0 = vector.load %arg1[%c0, %c0_0] : memref<16x1024xbf16, #tpu.memory_space<vmem>>, vector<16x1024xbf16>
    %c0_1 = arith.constant 0 : index
    %c0_2 = arith.constant 0 : index
    %1 = vector.load %arg2[%c0_1, %c0_2] : memref<1024x128xbf16, #tpu.memory_space<vmem>>, vector<1024x128xbf16>
    %cst = arith.constant dense<0.000000e+00> : vector<16x128xf32>
    %2 = tpu.matmul %0, %1, %cst {dimension_numbers = #tpu.dot_dimension_numbers<[1], [0], [0], [1], [0, 0, 1, 1], [], []>} : vector<16x1024xbf16>, vector<1024x128xbf16>, vector<16x128xf32> -> vector<16x128xf32>
    %c0_3 = arith.constant 0 : index
    %c0_4 = arith.constant 0 : index
    %3 = vector.load %arg3[%c0_3, %c0_4] : memref<1x128xf32, #tpu.memory_space<vmem>>, vector<1x128xf32>
    %4 = vector.broadcast %3 : vector<1x128xf32> to vector<16x128xf32>
    %5 = arith.addf %2, %4 : vector<16x128xf32>
    %c0_5 = arith.constant 0 : index
    %c0_6 = arith.constant 0 : index
    %6 = vector.load %arg4[%c0_5, %c0_6] : memref<16x128xf32, #tpu.memory_space<vmem>>, vector<16x128xf32>
    tpu.vector_store %arg4[%c0_5, %c0_6], %5 {strides = array<i32>} : memref<16x128xf32, #tpu.memory_space<vmem>>, vector<16x128xf32>,
    return
  }
  func.func @transform_0(%arg0: i32) -> (i32, i32) {
    %c0_i32 = arith.constant 0 : i32
    %c0_i32_0 = arith.constant 0 : i32
    return %arg0, %c0_i32 : i32, i32
  }
  func.func @transform_1(%arg0: i32) -> (i32, i32) {
    %c0_i32 = arith.constant 0 : i32
    %c0_i32_0 = arith.constant 0 : i32
    %c0_i32_1 = arith.constant 0 : i32
    return %c0_i32, %c0_i32_0 : i32, i32
  }
  func.func @transform_2(%arg0: i32) -> (i32, i32) {
    %c0_i32 = arith.constant 0 : i32
    %c0_i32_0 = arith.constant 0 : i32
    %c0_i32_1 = arith.constant 0 : i32
    return %c0_i32, %c0_i32_0 : i32, i32
  }
  func.func @transform_3(%arg0: i32) -> (i32, i32) {
    %c0_i32 = arith.constant 0 : i32
    %c0_i32_0 = arith.constant 0 : i32
    return %arg0, %c0_i32 : i32, i32
  }
}

</mosaic_0001>

<bundles_post_ra>
// kernel: forward.1
= control target key start
LH: loop header
LB: loop body
LE: loop exit
PB: predicated region body
PF: predicated region fallthrough
CT: control target
= control target key end

     0   :  { %8 = vsyncpa [#allocation3], 0  ;;  %s1103_s15 = smov [#allocation2]   ;;  %s1104_s17 = smov 64   ;;  %s1186_s0 = inlined_call_operand.vmem [shape: bf16[16,1024], index: 0, kind: input, shape index: {}]   ;;  %s1187_s1 = inlined_call_operand.hbm [shape: bf16[1024,128], index: 1, kind: input, shape index: {}]   ;;  %s1188_s2 = inlined_call_operand.vmem [shape: f32[1,128], index: 2, kind: input, shape index: {}]   ;;  %s1189_s3 = inlined_call_operand.vmem [shape: f32[16,128], index: 3, kind: output, shape index: {}]  }
   0x1   :  { %s15_s14 = sshll.u32 %s1187_s1, 4  ;;  %s17_s16 = sshll.u32 %s1103_s15, 4  ;;  %s16_s14 = int_to_ptr.hbm [resolvable:$true] %s15_s14  ;;  %s18_s16 = int_to_ptr.vmem [resolvable:$true] %s17_s16 }
   0x2   :  { %s1105_s18 = smov 4  }
   0x3   :  { %23 = dma.hbm_to_vmem [thread:$0]  %s16_s14, 8192, %s18_s16, [#allocation3], %s1104_s17, %s1104_s17, %s1105_s18  }
   0x4   :  { %1101 = dma.done.wait [#allocation3], 8192  }
   0x5   :  { %1102 = vsyncadd [#allocation3], 4294959104  ;;  %v1016_v0 = vld [vmem:[#allocation2 + $0x38] sm:$0xff]  ;;  %v1015_v4 = vld [vmem:[#allocation2 + $0x30] sm:$0xff] }
   0x6   :  { %v1024_v1 = vld [vmem:[#allocation2 + $0x78] sm:$0xff]  ;;  %594 = vmatpush.bf16.msra.mxu0 %v1016_v0  ;;  %v1023_v5 = vld [vmem:[#allocation2 + $0x70] sm:$0xff]  ;;  %v1014_v8 = vld [vmem:[#allocation2 + $0x28] sm:$0xff] }
   0x7   :  { %v1032_v2 = vld [vmem:[#allocation2 + $0xb8] sm:$0xff]  ;;  %608 = vmatpush.bf16.msra.mxu1 %v1024_v1  ;;  %v1031_v6 = vld [vmem:[#allocation2 + $0xb0] sm:$0xff]  ;;  %v1022_v9 = vld [vmem:[#allocation2 + $0x68] sm:$0xff] }
   0x8   :  { %v1040_v3 = vld [vmem:[#allocation2 + $0xf8] sm:$0xff]  ;;  %622 = vmatpush.bf16.msra.mxu2 %v1032_v2  ;;  %v1039_v7 = vld [vmem:[#allocation2 + $0xf0] sm:$0xff]  ;;  %v1030_v10 = vld [vmem:[#allocation2 + $0xa8] sm:$0xff] }
   0x9   :  { %636 = vmatpush.bf16.msra.mxu3 %v1040_v3  ;;  %v1038_v11 = vld [vmem:[#allocation2 + $0xe8] sm:$0xff]  ;;  %v1013_v12 = vld [vmem:[#allocation2 + $0x20] sm:$0xff]  ;;  %v1012_v16 = vld [vmem:[#allocation2 + $0x18] sm:$0xff] }
   0xa   :  { %595 = vmatpush.bf16.msra.mxu0 %v1015_v4  ;;  %v1021_v13 = vld [vmem:[#allocation2 + $0x60] sm:$0xff]  ;;  %v1020_v17 = vld [vmem:[#allocation2 + $0x58] sm:$0xff]  ;;  %v1011_v20 = vld [vmem:[#allocation2 + $0x10] sm:$0xff] }
   0xb   :  { %609 = vmatpush.bf16.msra.mxu1 %v1023_v5  ;;  %v1029_v14 = vld [vmem:[#allocation2 + $0xa0] sm:$0xff]  ;;  %v1028_v18 = vld [vmem:[#allocation2 + $0x98] sm:$0xff]  ;;  %v1019_v21 = vld [vmem:[#allocation2 + $0x50] sm:$0xff] }
   0xc   :  { %623 = vmatpush.bf16.msra.mxu2 %v1031_v6  ;;  %v1037_v15 = vld [vmem:[#allocation2 + $0xe0] sm:$0xff]  ;;  %v1036_v19 = vld [vmem:[#allocation2 + $0xd8] sm:$0xff]  ;;  %v1027_v22 = vld [vmem:[#allocation2 + $0x90] sm:$0xff] }
   0xd   :  { %637 = vmatpush.bf16.msra.mxu3 %v1039_v7  ;;  %v1035_v23 = vld [vmem:[#allocation2 + $0xd0] sm:$0xff]  ;;  %v1010_v24 = vld [vmem:[#allocation2 + $0x8] sm:$0xff]  ;;  %v1009_v28 = vld [vmem:[#allocation2] sm:$0xff] }
   0xe   :  { %596 = vmatpush.bf16.msra.mxu0 %v1014_v8  ;;  %v1018_v25 = vld [vmem:[#allocation2 + $0x48] sm:$0xff]  ;;  %v1017_v29 = vld [vmem:[#allocation2 + $0x40] sm:$0xff]  ;;  %v1048_v32 = vld [vmem:[#allocation2 + $0x138] sm:$0xff] }
   0xf   :  { %610 = vmatpush.bf16.msra.mxu1 %v1022_v9  ;;  %v1026_v26 = vld [vmem:[#allocation2 + $0x88] sm:$0xff]  ;;  %v1025_v30 = vld [vmem:[#allocation2 + $0x80] sm:$0xff]  ;;  %v1056_v33 = vld [vmem:[#allocation2 + $0x178] sm:$0xff] }
  0x10   :  { %624 = vmatpush.bf16.msra.mxu2 %v1030_v10  ;;  %v1034_v27 = vld [vmem:[#allocation2 + $0xc8] sm:$0xff]  ;;  %v1033_v31 = vld [vmem:[#allocation2 + $0xc0] sm:$0xff]  ;;  %v1064_v42 = vld [vmem:[#allocation2 + $0x1b8] sm:$0xff] }
  0x11   :  { %638 = vmatpush.bf16.msra.mxu3 %v1038_v11  ;;  %v723_v34 = vld [vmem:[%s1186_s0 + $0x8] sm:$0xf]  ;;  %v715_v36 = vld [vmem:[%s1186_s0] sm:$0xf]  ;;  %v1002_v38 = vld [vmem:[%s1186_s0 + $0xc] sm:$0xf] }
  0x12   :  { %597 = vmatpush.bf16.msra.mxu0 %v1013_v12  ;;  %v1006_v35 = vld [vmem:[%s1186_s0 + $0x24] sm:$0xf0]  ;;  %v1005_v37 = vld [vmem:[%s1186_s0 + $0x1c] sm:$0xf0]  ;;  %v725_v39 = vld [vmem:[%s1186_s0 + $0x28] sm:$0xf0] }
  0x13   :  { %611 = vmatpush.bf16.msra.mxu1 %v1021_v13  ;;  %v1001_v40 = vld [vmem:[%s1186_s0 + $0x4] sm:$0xf]  ;;  %v1072_v43 = vld [vmem:[#allocation2 + $0x1f8] sm:$0xff]  ;;  %v724_v44 = vor.u32 %v1006_v35, %v723_v34  ;;  %v716_v45 = vor.u32 %v1005_v37, %v715_v36  ;;  %v728_v46 = vor.u32 %v1002_v38, %v725_v39  ;;  %v1047_v48 = vld [vmem:[#allocation2 + $0x130] sm:$0xff] }
  0x14   :  { %625 = vmatpush.bf16.msra.mxu2 %v1029_v14  ;;  %v717_v41 = vld [vmem:[%s1186_s0 + $0x20] sm:$0xf0]  ;;  %v1055_v49 = vld [vmem:[#allocation2 + $0x170] sm:$0xff]  ;;  %v1046_v52 = vld [vmem:[#allocation2 + $0x128] sm:$0xff] }
  0x15   :  { %639 = vmatpush.bf16.msra.mxu3 %v1037_v15  ;;  %v720_v47 = vor.u32 %v1001_v40, %v717_v41  ;;  %v1063_v50 = vld [vmem:[#allocation2 + $0x1b0] sm:$0xff]  ;;  %v1054_v53 = vld [vmem:[#allocation2 + $0x168] sm:$0xff]  ;;  %v1045_v56 = vld [vmem:[#allocation2 + $0x120] sm:$0xff] }
  0x16   :  { %598 = vmatpush.bf16.msra.mxu0 %v1012_v16  ;;  %v1071_v51 = vld [vmem:[#allocation2 + $0x1f0] sm:$0xff]  ;;  %v1062_v54 = vld [vmem:[#allocation2 + $0x1a8] sm:$0xff]  ;;  %v1053_v57 = vld [vmem:[#allocation2 + $0x160] sm:$0xff] }
  0x17   :  { %612 = vmatpush.bf16.msra.mxu1 %v1020_v17  ;;  %v1070_v55 = vld [vmem:[#allocation2 + $0x1e8] sm:$0xff]  ;;  %v1061_v58 = vld [vmem:[#allocation2 + $0x1a0] sm:$0xff]  ;;  %v1044_v60 = vld [vmem:[#allocation2 + $0x118] sm:$0xff] }
  0x18   :  { %626 = vmatpush.bf16.msra.mxu2 %v1028_v18  ;;  %v1069_v59 = vld [vmem:[#allocation2 + $0x1e0] sm:$0xff]  ;;  %v1052_v61 = vld [vmem:[#allocation2 + $0x158] sm:$0xff]  ;;  %v1043_v0 = vld [vmem:[#allocation2 + $0x110] sm:$0xff] }
  0x19   :  { %640 = vmatpush.bf16.msra.mxu3 %v1036_v19  ;;  %v1060_v62 = vld [vmem:[#allocation2 + $0x198] sm:$0xff]  ;;  %v1051_v1 = vld [vmem:[#allocation2 + $0x150] sm:$0xff]  ;;  %v1042_v4 = vld [vmem:[#allocation2 + $0x108] sm:$0xff] }
  0x1a   :  { %599 = vmatpush.bf16.msra.mxu0 %v1011_v20  ;;  %v1068_v63 = vld [vmem:[#allocation2 + $0x1d8] sm:$0xff]  ;;  %v1059_v2 = vld [vmem:[#allocation2 + $0x190] sm:$0xff]  ;;  %v1050_v5 = vld [vmem:[#allocation2 + $0x148] sm:$0xff] }
  0x1b   :  { %613 = vmatpush.bf16.msra.mxu1 %v1019_v21  ;;  %v1067_v3 = vld [vmem:[#allocation2 + $0x1d0] sm:$0xff]  ;;  %v1058_v6 = vld [vmem:[#allocation2 + $0x188] sm:$0xff]  ;;  %v1041_v8 = vld [vmem:[#allocation2 + $0x100] sm:$0xff] }
  0x1c   :  { %627 = vmatpush.bf16.msra.mxu2 %v1027_v22  ;;  %v1066_v7 = vld [vmem:[#allocation2 + $0x1c8] sm:$0xff]  ;;  %v1049_v9 = vld [vmem:[#allocation2 + $0x140] sm:$0xff]  ;;  %v731_v12 = vld [vmem:[%s1186_s0 + $0x10] sm:$0xf] }
  0x1d   :  { %641 = vmatpush.bf16.msra.mxu3 %v1035_v23  ;;  %v1057_v10 = vld [vmem:[#allocation2 + $0x180] sm:$0xff]  ;;  %v1007_v13 = vld [vmem:[%s1186_s0 + $0x2c] sm:$0xf0]  ;;  %v1003_v14 = vld [vmem:[%s1186_s0 + $0x14] sm:$0xf] }
  0x1e   :  { %600 = vmatpush.bf16.msra.mxu0 %v1010_v24  ;;  %v1065_v11 = vld [vmem:[#allocation2 + $0x1c0] sm:$0xff]  ;;  %v733_v15 = vld [vmem:[%s1186_s0 + $0x30] sm:$0xf0]  ;;  %v739_v16 = vld [vmem:[%s1186_s0 + $0x18] sm:$0xf]  ;;  %v732_v20 = vor.u32 %v1007_v13, %v731_v12 }
  0x1f   :  { %614 = vmatpush.bf16.msra.mxu1 %v1018_v25  ;;  %v1008_v17 = vld [vmem:[%s1186_s0 + $0x34] sm:$0xf0]  ;;  %v1004_v18 = vld [vmem:[%s1186_s0 + $0x1c] sm:$0xf]  ;;  %v736_v21 = vor.u32 %v1003_v14, %v733_v15  ;;  %v1076_v25 = vld [vmem:[%s1188_s2] ss:$0 sm:$0xff] }
  0x20   :  { %628 = vmatpush.bf16.msra.mxu2 %v1026_v26  ;;  %v741_v19 = vld [vmem:[%s1186_s0 + $0x38] sm:$0xf0]  ;;  %v740_v22 = vor.u32 %v1008_v17, %v739_v16 }
  0x21   :  { %642 = vmatpush.bf16.msra.mxu3 %v1034_v27  ;;  %v744_v23 = vor.u32 %v1004_v18, %v741_v19 }
  0x22   :  { %601 = vmatpush.bf16.msra.mxu0 %v1009_v28 }
  0x23   :  { %615 = vmatpush.bf16.msra.mxu1 %v1017_v29 }
  0x24   :  { %629 = vmatpush.bf16.msra.mxu2 %v1025_v30 }
  0x25   :  { %643 = vmatpush.bf16.msra.mxu3 %v1033_v31  ;;  %602 = vmatmul.bf16.vlgmr.msra.gmra.mxu0 %v716_v45 }
  0x26   :  { %650 = vmatpush.bf16.msrb.mxu0 %v1048_v32  ;;  %616 = vmatmul.bf16.vlgmr.msra.gmra.mxu1 %v720_v47 }
  0x27   :  { %664 = vmatpush.bf16.msrb.mxu1 %v1056_v33  ;;  %630 = vmatmul.bf16.vlgmr.msra.gmra.mxu2 %v724_v44 }
  0x28   :  { %678 = vmatpush.bf16.msrb.mxu2 %v1064_v42  ;;  %644 = vmatmul.bf16.vlgmr.msra.gmra.mxu3 %v728_v46 }
  0x29   :  { %692 = vmatpush.bf16.msrb.mxu3 %v1072_v43 }
  0x2a   :  { %651 = vmatpush.bf16.msrb.mxu0 %v1047_v48 }
  0x2b   :  { %665 = vmatpush.bf16.msrb.mxu1 %v1055_v49 }
  0x2c   :  { %679 = vmatpush.bf16.msrb.mxu2 %v1063_v50 }
  0x2d   :  { %693 = vmatpush.bf16.msrb.mxu3 %v1071_v51 }
  0x2e   :  { %652 = vmatpush.bf16.msrb.mxu0 %v1046_v52 }
  0x2f   :  { %666 = vmatpush.bf16.msrb.mxu1 %v1054_v53 }
  0x30   :  { %680 = vmatpush.bf16.msrb.mxu2 %v1062_v54 }
  0x31   :  { %694 = vmatpush.bf16.msrb.mxu3 %v1070_v55 }
  0x32   :  { %653 = vmatpush.bf16.msrb.mxu0 %v1045_v56 }
  0x33   :  { %667 = vmatpush.bf16.msrb.mxu1 %v1053_v57 }
  0x34   :  { %681 = vmatpush.bf16.msrb.mxu2 %v1061_v58 }
  0x35   :  { %695 = vmatpush.bf16.msrb.mxu3 %v1069_v59 }
  0x36   :  { %654 = vmatpush.bf16.msrb.mxu0 %v1044_v60 }
  0x37   :  { %668 = vmatpush.bf16.msrb.mxu1 %v1052_v61 }
  0x38   :  { %682 = vmatpush.bf16.msrb.mxu2 %v1060_v62 }
  0x39   :  { %696 = vmatpush.bf16.msrb.mxu3 %v1068_v63 }
  0x3a   :  { %655 = vmatpush.bf16.msrb.mxu0 %v1043_v0 }
  0x3b   :  { %669 = vmatpush.bf16.msrb.mxu1 %v1051_v1 }
  0x3c   :  { %683 = vmatpush.bf16.msrb.mxu2 %v1059_v2 }
  0x3d   :  { %697 = vmatpush.bf16.msrb.mxu3 %v1067_v3 }
  0x3e   :  { %656 = vmatpush.bf16.msrb.mxu0 %v1042_v4 }
  0x3f   :  { %670 = vmatpush.bf16.msrb.mxu1 %v1050_v5 }
  0x40   :  { %684 = vmatpush.bf16.msrb.mxu2 %v1058_v6 }
  0x41   :  { %698 = vmatpush.bf16.msrb.mxu3 %v1066_v7 }
  0x42   :  { %657 = vmatpush.bf16.msrb.mxu0 %v1041_v8 }
  0x43   :  { %671 = vmatpush.bf16.msrb.mxu1 %v1049_v9 }
  0x44   :  { %685 = vmatpush.bf16.msrb.mxu2 %v1057_v10 }
  0x45   :  { %699 = vmatpush.bf16.msrb.mxu3 %v1065_v11  ;;  %658 = vmatmul.bf16.vlgmr.msrb.gmra.mxu0 %v732_v20 }
  0x46   :  { %672 = vmatmul.bf16.vlgmr.msrb.gmra.mxu1 %v736_v21 }
  0x47   :  { %686 = vmatmul.bf16.vlgmr.msrb.gmra.mxu2 %v740_v22 }
  0x48   :  { %700 = vmatmul.bf16.vlgmr.msrb.gmra.mxu3 %v744_v23 }
  0xa2   :  { %v603_v24 = vpop.f32.mrf.mxu0 }
  0xa3   :  { %v617_v26 = vpop.f32.mrf.mxu1  ;;  %v604_v27 = vadd.f32 %v1076_v25, %v603_v24 }
  0xa5   :  { %v618_v30 = vadd.f32 %v617_v26, %v604_v27 }
  0xaa   :  { %v631_v28 = vpop.f32.mrf.mxu2  ;;  %v605_v31 = vpop.f32.mrf.mxu0 }
  0xab   :  { %v645_v29 = vpop.f32.mrf.mxu3  ;;  %v619_v32 = vpop.f32.mrf.mxu1  ;;  %v632_v33 = vadd.f32 %v631_v28, %v618_v30  ;;  %v606_v34 = vadd.f32 %v1076_v25, %v605_v31 }
  0xad   :  { %v646_v37 = vadd.f32 %v645_v29, %v632_v33  ;;  %v620_v38 = vadd.f32 %v619_v32, %v606_v34 }
  0xb2   :  { %v633_v35 = vpop.f32.mrf.mxu2 }
  0xb3   :  { %v647_v36 = vpop.f32.mrf.mxu3  ;;  %v634_v42 = vadd.f32 %v633_v35, %v620_v38 }
  0xb5   :  { %v648_v46 = vadd.f32 %v647_v36, %v634_v42 }
  0xc2   :  { %v659_v39 = vpop.f32.mrf.mxu0 }
  0xc3   :  { %v660_v40 = vadd.f32 %v659_v39, %v646_v37  ;;  %v673_v41 = vpop.f32.mrf.mxu1 }
  0xc5   :  { %v674_v43 = vadd.f32 %v673_v41, %v660_v40 }
  0xca   :  { %v687_v44 = vpop.f32.mrf.mxu2  ;;  %v661_v48 = vpop.f32.mrf.mxu0 }
  0xcb   :  { %v701_v45 = vpop.f32.mrf.mxu3  ;;  %v688_v47 = vadd.f32 %v687_v44, %v674_v43  ;;  %v662_v50 = vadd.f32 %v661_v48, %v648_v46  ;;  %v675_v51 = vpop.f32.mrf.mxu1 }
  0xcd   :  { %v702_v49 = vadd.f32 %v701_v45, %v688_v47  ;;  %v676_v52 = vadd.f32 %v675_v51, %v662_v50 }
  0xcf   :  { %706 = vst [vmem:[%s1189_s3] sm:$0xff] %v702_v49 }
  0xd2   :  { %v689_v53 = vpop.f32.mrf.mxu2 }
  0xd3   :  { %v690_v54 = vadd.f32 %v689_v53, %v676_v52  ;;  %v703_v55 = vpop.f32.mrf.mxu3 }
  0xd5   :  { %v704_v56 = vadd.f32 %v703_v55, %v690_v54 }
  0xd7   :  { %707 = vst [vmem:[%s1189_s3 + $0x8] sm:$0xff] %v704_v56 }
  0xd8   :  { %712 = vsyncpa [#allocation3], 1 }

</bundles_post_ra>
